<compile_context>
chip_gen: v6e
topology: v6e:2x2x1
jax: 0.10.0
libtpu: 0.0.40
codegen_flags: <defaults>
</compile_context>

<pallas_src>
import math
import functools

import jax
import jax.numpy as jnp
from jax import lax
from jax.experimental import pallas as pl
from jax.experimental.pallas import tpu as pltpu


def _mha_kernel(x_ref, mask_ref, wq_ref, wk_ref, wv_ref, wo_ref, bo_ref,
                out_ref, q_s, k_s, v_s, ctx_s, *, heads, q_tile):
    # x_ref:    (1, S, D)  bf16   full sequence for this batch (resident across qi)
    # mask_ref: (1, TQ, S) int8   1 = keep, 0 = masked
    # wq_ref:   (D, D)     bf16   (already scaled by 1/sqrt(dv))
    # wk/wv/wo: (D, D)     bf16
    # bo_ref:   (1, D)     f32
    # out_ref:  (1, TQ, D) f32
    # q_s:      (H, TQ, dv) bf16  scratch
    # k_s/v_s:  (H, S,  dv) bf16  scratch (K/V cache, computed once per batch)
    # ctx_s:    (TQ, D)     bf16  scratch (merged-head context)
    f32 = jnp.float32
    bf16 = jnp.bfloat16

    H = heads
    TQ = q_tile
    S = x_ref.shape[1]
    D = x_ref.shape[2]
    dv = D // H
    qi = pl.program_id(1)

    # ---- K/V projections: computed ONCE per batch (qi == 0), cached in VMEM
    #      scratch head-major, reused across all q tiles (qi is "arbitrary"). ----
    @pl.when(qi == 0)
    def _():
        x_full = x_ref[0]                                              # (S, D) bf16
        # Dense, lane-dense (S,D)@(D,D) matmuls (full MXU width), f32 accumulate.
        k_flat = jnp.dot(x_full, wk_ref[...], preferred_element_type=f32)   # (S, D)
        v_flat = jnp.dot(x_full, wv_ref[...], preferred_element_type=f32)   # (S, D)
        # Scatter head columns into head-major scratch (static unroll over H).
        for h in range(H):
            sl = slice(h * dv, (h + 1) * dv)
            k_s[h] = k_flat[:, sl].astype(bf16)
            v_s[h] = v_flat[:, sl].astype(bf16)

    # ---- Q projection for this tile: slice q rows from the resident block
    #      (no duplicate input stream); 1/sqrt(dv) already folded into Wq. ----
    row0 = pl.multiple_of(qi * TQ, TQ)
    x_q = x_ref[0, pl.ds(row0, TQ), :]                                 # (TQ, D) bf16
    q_flat = jnp.dot(x_q, wq_ref[...], preferred_element_type=f32)     # (TQ, D) f32
    for h in range(H):
        sl = slice(h * dv, (h + 1) * dv)
        q_s[h] = q_flat[:, sl].astype(bf16)

    # ---- Scores: head-batched Q.K^T (contract dv directly; leading batch = H). ----
    dn_qk = (((2,), (2,)), ((0,), (0,)))
    scores = lax.dot_general(q_s[...], k_s[...], dn_qk,
                             preferred_element_type=f32)               # (H, TQ, S)

    # masked_fill(mask == 0, -1e9); upcast mask to f32 first so the compare /
    # select stays in f32 layout (int8 only on the HBM wire).
    keep_f = mask_ref[0].astype(f32)                                   # (TQ, S)
    scores = jnp.where((keep_f == 0.0)[None, :, :],
                       jnp.float32(-1.0e9), scores)

    # ---- Softmax (f32 math; reciprocal on the otherwise-idle EUP). ----
    m = jnp.max(scores, axis=-1, keepdims=True)
    p = jnp.exp(scores - m)
    denom = jnp.sum(p, axis=-1, keepdims=True)
    p = p * pl.reciprocal(denom, approx=True)                          # (H, TQ, S)

    # ---- ctx = P @ V (head-batched). ----
    dn_pv = (((2,), (1,)), ((0,), (0,)))
    ctx = lax.dot_general(p.astype(bf16), v_s[...], dn_pv,
                          preferred_element_type=f32)                  # (H, TQ, dv)

    # ---- Output projection: merge heads back to (TQ, D) via a column scatter,
    #      then ONE dense (TQ,D)@(D,D) matmul -> head-sum happens on the MXU K dim. ----
    for h in range(H):
        sl = slice(h * dv, (h + 1) * dv)
        ctx_s[:, sl] = ctx[h].astype(bf16)
    out = jnp.dot(ctx_s[...], wo_ref[...], preferred_element_type=f32) + bo_ref[...]
    out_ref[0] = out.astype(out_ref.dtype)                             # lane-dense (TQ, D)


def multi_head_attention(x, mask, wq, wk, wv, wo, bo, *, heads, q_tile=None):
    """x: (B, S, D) f32; mask: (B, S, S) int (1=keep, 0=masked);
    weights (D, D) stored as (in, out); bo: (D,)."""
    B, S, D = x.shape
    assert D % heads == 0, "d_model must be divisible by heads"
    dv = D // heads
    if q_tile is None:
        q_tile = min(S, 128)
    assert S % q_tile == 0
    nq = S // q_tile

    # Wrapper-side layout / dtype prep (plain XLA, one-time constant work):
    scale = 1.0 / math.sqrt(dv)
    xb = x.astype(jnp.bfloat16)
    mask_i8 = (mask != 0).astype(jnp.int8)                # 1 byte/elem on the wire
    wq_b = (wq * scale).astype(jnp.bfloat16)              # fold 1/sqrt(dv) into Wq
    wk_b = wk.astype(jnp.bfloat16)
    wv_b = wv.astype(jnp.bfloat16)
    wo_b = wo.astype(jnp.bfloat16)
    bo2 = bo.reshape(1, D).astype(jnp.float32)

    kernel = functools.partial(_mha_kernel, heads=heads, q_tile=q_tile)

    return pl.pallas_call(
        kernel,
        out_shape=jax.ShapeDtypeStruct((B, S, D), jnp.float32),
        grid_spec=pltpu.PrefetchScalarGridSpec(
            num_scalar_prefetch=0,
            grid=(B, nq),
            in_specs=[
                pl.BlockSpec((1, S, D), lambda b, qi: (b, 0, 0)),        # x (full seq, resident)
                pl.BlockSpec((1, q_tile, S), lambda b, qi: (b, qi, 0)),  # mask (int8)
                pl.BlockSpec((D, D), lambda b, qi: (0, 0)),              # Wq (scaled)
                pl.BlockSpec((D, D), lambda b, qi: (0, 0)),              # Wk
                pl.BlockSpec((D, D), lambda b, qi: (0, 0)),              # Wv
                pl.BlockSpec((D, D), lambda b, qi: (0, 0)),              # Wo
                pl.BlockSpec((1, D), lambda b, qi: (0, 0)),              # b_out
            ],
            out_specs=pl.BlockSpec((1, q_tile, D), lambda b, qi: (b, qi, 0)),
            scratch_shapes=[
                pltpu.VMEM((heads, q_tile, dv), jnp.bfloat16),   # q_s
                pltpu.VMEM((heads, S, dv), jnp.bfloat16),        # k_s (K cache)
                pltpu.VMEM((heads, S, dv), jnp.bfloat16),        # v_s (V cache)
                pltpu.VMEM((q_tile, D), jnp.bfloat16),           # ctx_s (merged heads)
            ],
        ),
        compiler_params=pltpu.CompilerParams(
            # b parallel (megacore / dual-TC split), qi arbitrary so the cached
            # K/V scratch stays valid across q tiles of the same batch.
            dimension_semantics=("parallel", "arbitrary"),
            vmem_limit_bytes=64 * 1024 * 1024,
        ),
    )(xb, mask_i8, wq_b, wk_b, wv_b, wo_b, bo2)


def _reference(x, mask, wq, wk, wv, wo, bo, *, heads):
    """Pure-JAX f32 reference mirroring the PyTorch forward (eval mode)."""
    B, S, D = x.shape
    dv = D // heads
    q = x @ wq
    k = x @ wk
    v = x @ wv
    q = q.reshape(B, S, heads, dv).transpose(0, 2, 1, 3)
    k = k.reshape(B, S, heads, dv).transpose(0, 2, 1, 3)
    v = v.reshape(B, S, heads, dv).transpose(0, 2, 1, 3)
    attn = jnp.einsum("bhqd,bhkd->bhqk", q, k) / math.sqrt(dv)
    attn = jnp.where(mask[:, None, :, :] == 0, -1.0e9, attn)
    attn = jax.nn.softmax(attn, axis=-1)
    proj = jnp.einsum("bhqk,bhkd->bhqd", attn, v)
    proj = proj.transpose(0, 2, 1, 3).reshape(B, S, D)
    return proj @ wo + bo


if __name__ == "__main__":
    B, S, D, H = 2, 8, 32, 4          # batch, seq, d_model, heads
    key = jax.random.PRNGKey(0)
    kx, kq, kk, kv, ko, kb, km = jax.random.split(key, 7)

    x = jax.random.normal(kx, (B, S, D), dtype=jnp.float32)

    # nn.Linear(d_model, d_model) weights; stored pre-transposed as (in, out).
    bound = 1.0 / math.sqrt(D)
    wq = jax.random.uniform(kq, (D, D), jnp.float32, -bound, bound)
    wk = jax.random.uniform(kk, (D, D), jnp.float32, -bound, bound)
    wv = jax.random.uniform(kv, (D, D), jnp.float32, -bound, bound)
    wo = jax.random.uniform(ko, (D, D), jnp.float32, -bound, bound)
    bo = jax.random.uniform(kb, (D,), jnp.float32, -bound, bound)

    # Binary mask (1 = attend, 0 = masked); guarantee no fully-masked row.
    mask = (jax.random.uniform(km, (B, S, S)) > 0.2).astype(jnp.int32)
    mask = mask.at[:, :, 0].set(1)

    out = multi_head_attention(x, mask, wq, wk, wv, wo, bo, heads=H)
    out = jax.block_until_ready(out)

    ref = _reference(x, mask, wq, wk, wv, wo, bo, heads=H)
    assert out.shape == (B, S, D)
    # bf16 MXU inputs with f32 accumulation + approx reciprocal -> relaxed tol.
    assert jnp.allclose(out, ref, atol=3e-2, rtol=3e-2), "mismatch vs reference"

    print("KERNEL_OK")
</pallas_src>

<mosaic_0001>
module attributes {stable_mosaic.version = 11 : i64} {
  func.func @_mha_kernel(%arg0: i32, %arg1: i32, %arg2: memref<1x8x32xbf16, #tpu.memory_space<vmem>>, %arg3: memref<1x8x8xi8, #tpu.memory_space<vmem>>, %arg4: memref<32x32xbf16, #tpu.memory_space<vmem>>, %arg5: memref<32x32xbf16, #tpu.memory_space<vmem>>, %arg6: memref<32x32xbf16, #tpu.memory_space<vmem>>, %arg7: memref<32x32xbf16, #tpu.memory_space<vmem>>, %arg8: memref<1x32xf32, #tpu.memory_space<vmem>>, %arg9: memref<1x8x32xf32, #tpu.memory_space<vmem>>, %arg10: memref<4x8x8xbf16, #tpu.memory_space<vmem>>, %arg11: memref<4x8x8xbf16, #tpu.memory_space<vmem>>, %arg12: memref<4x8x8xbf16, #tpu.memory_space<vmem>>, %arg13: memref<8x32xbf16, #tpu.memory_space<vmem>>) attributes {dimension_semantics = [#tpu.dimension_semantics<parallel>, #tpu.dimension_semantics<arbitrary>], iteration_bounds = array<i64: 2, 1>, scalar_prefetch = 0 : i64, scratch_operands = 4 : i64, tpu.core_type = #tpu.core_type<tc>, window_params = [{transform_indices = @transform_0, window_bounds = array<i64: 1, 8, 32>}, {transform_indices = @transform_1, window_bounds = array<i64: 1, 8, 8>}, {pipeline_mode = #tpu.pipeline_mode<synchronous>, transform_indices = @transform_2, window_bounds = array<i64: 32, 32>}, {pipeline_mode = #tpu.pipeline_mode<synchronous>, transform_indices = @transform_3, window_bounds = array<i64: 32, 32>}, {pipeline_mode = #tpu.pipeline_mode<synchronous>, transform_indices = @transform_4, window_bounds = array<i64: 32, 32>}, {pipeline_mode = #tpu.pipeline_mode<synchronous>, transform_indices = @transform_5, window_bounds = array<i64: 32, 32>}, {pipeline_mode = #tpu.pipeline_mode<synchronous>, transform_indices = @transform_6, window_bounds = array<i64: 1, 32>}, {transform_indices = @transform_7, window_bounds = array<i64: 1, 8, 32>}]} {
    %c0_i32 = arith.constant 0 : i32
    %0 = arith.cmpi eq, %arg1, %c0_i32 : i32
    %1 = arith.extui %0 : i1 to i32
    %c0_i32_0 = arith.constant 0 : i32
    %2 = arith.cmpi ne, %1, %c0_i32_0 : i32
    scf.if %2 {
      %c0_46 = arith.constant 0 : index
      %c0_47 = arith.constant 0 : index
      %c0_48 = arith.constant 0 : index
      %81 = vector.load %arg2[%c0_46, %c0_47, %c0_48] : memref<1x8x32xbf16, #tpu.memory_space<vmem>>, vector<1x8x32xbf16>
      %82 = vector.shape_cast %81 : vector<1x8x32xbf16> to vector<8x32xbf16>
      %c0_49 = arith.constant 0 : index
      %c0_50 = arith.constant 0 : index
      %83 = vector.load %arg5[%c0_49, %c0_50] : memref<32x32xbf16, #tpu.memory_space<vmem>>, vector<32x32xbf16>
      %cst_51 = arith.constant dense<0.000000e+00> : vector<8x32xf32>
      %84 = tpu.matmul %82, %83, %cst_51 {dimension_numbers = #tpu.dot_dimension_numbers<[1], [0], [0], [1], [0, 0, 1, 1], [], []>} : vector<8x32xbf16>, vector<32x32xbf16>, vector<8x32xf32> -> vector<8x32xf32>
      %c0_52 = arith.constant 0 : index
      %c0_53 = arith.constant 0 : index
      %85 = vector.load %arg6[%c0_52, %c0_53] : memref<32x32xbf16, #tpu.memory_space<vmem>>, vector<32x32xbf16>
      %cst_54 = arith.constant dense<0.000000e+00> : vector<8x32xf32>
      %86 = tpu.matmul %82, %85, %cst_54 {dimension_numbers = #tpu.dot_dimension_numbers<[1], [0], [0], [1], [0, 0, 1, 1], [], []>} : vector<8x32xbf16>, vector<32x32xbf16>, vector<8x32xf32> -> vector<8x32xf32>
      %87 = vector.extract_strided_slice %84 {offsets = [0, 0], sizes = [8, 8], strides = [1, 1]} : vector<8x32xf32> to vector<8x8xf32>
      %88 = arith.truncf %87 : vector<8x8xf32> to vector<8x8xbf16>
      %c0_55 = arith.constant 0 : index
      %c0_56 = arith.constant 0 : index
      %c0_57 = arith.constant 0 : index
      %89 = vector.load %arg11[%c0_55, %c0_56, %c0_57] : memref<4x8x8xbf16, #tpu.memory_space<vmem>>, vector<1x8x8xbf16>
      %90 = vector.shape_cast %89 : vector<1x8x8xbf16> to vector<8x8xbf16>
      %91 = vector.shape_cast %88 : vector<8x8xbf16> to vector<1x8x8xbf16>
      tpu.vector_store %arg11[%c0_55, %c0_56, %c0_57], %91 {strides = array<i32>} : memref<4x8x8xbf16, #tpu.memory_space<vmem>>, vector<1x8x8xbf16>,
      %92 = vector.extract_strided_slice %86 {offsets = [0, 0], sizes = [8, 8], strides = [1, 1]} : vector<8x32xf32> to vector<8x8xf32>
      %93 = arith.truncf %92 : vector<8x8xf32> to vector<8x8xbf16>
      %c0_58 = arith.constant 0 : index
      %c0_59 = arith.constant 0 : index
      %c0_60 = arith.constant 0 : index
      %94 = vector.load %arg12[%c0_58, %c0_59, %c0_60] : memref<4x8x8xbf16, #tpu.memory_space<vmem>>, vector<1x8x8xbf16>
      %95 = vector.shape_cast %94 : vector<1x8x8xbf16> to vector<8x8xbf16>
      %96 = vector.shape_cast %93 : vector<8x8xbf16> to vector<1x8x8xbf16>
      tpu.vector_store %arg12[%c0_58, %c0_59, %c0_60], %96 {strides = array<i32>} : memref<4x8x8xbf16, #tpu.memory_space<vmem>>, vector<1x8x8xbf16>,
      %97 = vector.extract_strided_slice %84 {offsets = [0, 8], sizes = [8, 8], strides = [1, 1]} : vector<8x32xf32> to vector<8x8xf32>
      %98 = arith.truncf %97 : vector<8x8xf32> to vector<8x8xbf16>
      %c1_61 = arith.constant 1 : index
      %c0_62 = arith.constant 0 : index
      %c0_63 = arith.constant 0 : index
      %99 = vector.load %arg11[%c1_61, %c0_62, %c0_63] : memref<4x8x8xbf16, #tpu.memory_space<vmem>>, vector<1x8x8xbf16>
      %100 = vector.shape_cast %99 : vector<1x8x8xbf16> to vector<8x8xbf16>
      %101 = vector.shape_cast %98 : vector<8x8xbf16> to vector<1x8x8xbf16>
      tpu.vector_store %arg11[%c1_61, %c0_62, %c0_63], %101 {strides = array<i32>} : memref<4x8x8xbf16, #tpu.memory_space<vmem>>, vector<1x8x8xbf16>,
      %102 = vector.extract_strided_slice %86 {offsets = [0, 8], sizes = [8, 8], strides = [1, 1]} : vector<8x32xf32> to vector<8x8xf32>
      %103 = arith.truncf %102 : vector<8x8xf32> to vector<8x8xbf16>
      %c1_64 = arith.constant 1 : index
      %c0_65 = arith.constant 0 : index
      %c0_66 = arith.constant 0 : index
      %104 = vector.load %arg12[%c1_64, %c0_65, %c0_66] : memref<4x8x8xbf16, #tpu.memory_space<vmem>>, vector<1x8x8xbf16>
      %105 = vector.shape_cast %104 : vector<1x8x8xbf16> to vector<8x8xbf16>
      %106 = vector.shape_cast %103 : vector<8x8xbf16> to vector<1x8x8xbf16>
      tpu.vector_store %arg12[%c1_64, %c0_65, %c0_66], %106 {strides = array<i32>} : memref<4x8x8xbf16, #tpu.memory_space<vmem>>, vector<1x8x8xbf16>,
      %107 = vector.extract_strided_slice %84 {offsets = [0, 16], sizes = [8, 8], strides = [1, 1]} : vector<8x32xf32> to vector<8x8xf32>
      %108 = arith.truncf %107 : vector<8x8xf32> to vector<8x8xbf16>
      %c2_67 = arith.constant 2 : index
      %c0_68 = arith.constant 0 : index
      %c0_69 = arith.constant 0 : index
      %109 = vector.load %arg11[%c2_67, %c0_68, %c0_69] : memref<4x8x8xbf16, #tpu.memory_space<vmem>>, vector<1x8x8xbf16>
      %110 = vector.shape_cast %109 : vector<1x8x8xbf16> to vector<8x8xbf16>
      %111 = vector.shape_cast %108 : vector<8x8xbf16> to vector<1x8x8xbf16>
      tpu.vector_store %arg11[%c2_67, %c0_68, %c0_69], %111 {strides = array<i32>} : memref<4x8x8xbf16, #tpu.memory_space<vmem>>, vector<1x8x8xbf16>,
      %112 = vector.extract_strided_slice %86 {offsets = [0, 16], sizes = [8, 8], strides = [1, 1]} : vector<8x32xf32> to vector<8x8xf32>
      %113 = arith.truncf %112 : vector<8x8xf32> to vector<8x8xbf16>
      %c2_70 = arith.constant 2 : index
      %c0_71 = arith.constant 0 : index
      %c0_72 = arith.constant 0 : index
      %114 = vector.load %arg12[%c2_70, %c0_71, %c0_72] : memref<4x8x8xbf16, #tpu.memory_space<vmem>>, vector<1x8x8xbf16>
      %115 = vector.shape_cast %114 : vector<1x8x8xbf16> to vector<8x8xbf16>
      %116 = vector.shape_cast %113 : vector<8x8xbf16> to vector<1x8x8xbf16>
      tpu.vector_store %arg12[%c2_70, %c0_71, %c0_72], %116 {strides = array<i32>} : memref<4x8x8xbf16, #tpu.memory_space<vmem>>, vector<1x8x8xbf16>,
      %117 = vector.extract_strided_slice %84 {offsets = [0, 24], sizes = [8, 8], strides = [1, 1]} : vector<8x32xf32> to vector<8x8xf32>
      %118 = arith.truncf %117 : vector<8x8xf32> to vector<8x8xbf16>
      %c3_73 = arith.constant 3 : index
      %c0_74 = arith.constant 0 : index
      %c0_75 = arith.constant 0 : index
      %119 = vector.load %arg11[%c3_73, %c0_74, %c0_75] : memref<4x8x8xbf16, #tpu.memory_space<vmem>>, vector<1x8x8xbf16>
      %120 = vector.shape_cast %119 : vector<1x8x8xbf16> to vector<8x8xbf16>
      %121 = vector.shape_cast %118 : vector<8x8xbf16> to vector<1x8x8xbf16>
      tpu.vector_store %arg11[%c3_73, %c0_74, %c0_75], %121 {strides = array<i32>} : memref<4x8x8xbf16, #tpu.memory_space<vmem>>, vector<1x8x8xbf16>,
      %122 = vector.extract_strided_slice %86 {offsets = [0, 24], sizes = [8, 8], strides = [1, 1]} : vector<8x32xf32> to vector<8x8xf32>
      %123 = arith.truncf %122 : vector<8x8xf32> to vector<8x8xbf16>
      %c3_76 = arith.constant 3 : index
      %c0_77 = arith.constant 0 : index
      %c0_78 = arith.constant 0 : index
      %124 = vector.load %arg12[%c3_76, %c0_77, %c0_78] : memref<4x8x8xbf16, #tpu.memory_space<vmem>>, vector<1x8x8xbf16>
      %125 = vector.shape_cast %124 : vector<1x8x8xbf16> to vector<8x8xbf16>
      %126 = vector.shape_cast %123 : vector<8x8xbf16> to vector<1x8x8xbf16>
      tpu.vector_store %arg12[%c3_76, %c0_77, %c0_78], %126 {strides = array<i32>} : memref<4x8x8xbf16, #tpu.memory_space<vmem>>, vector<1x8x8xbf16>,
    } else {
    }
    %c8_i32 = arith.constant 8 : i32
    %3 = arith.muli %arg1, %c8_i32 : i32
    %4 = tpu.assume_multiple %3, 8 : i32
    %c0 = arith.constant 0 : index
    %5 = arith.index_cast %4 : i32 to index
    %c0_1 = arith.constant 0 : index
    %6 = vector.load %arg2[%c0, %5, %c0_1] : memref<1x8x32xbf16, #tpu.memory_space<vmem>>, vector<1x8x32xbf16>
    %7 = vector.shape_cast %6 : vector<1x8x32xbf16> to vector<8x32xbf16>
    %c0_2 = arith.constant 0 : index
    %c0_3 = arith.constant 0 : index
    %8 = vector.load %arg4[%c0_2, %c0_3] : memref<32x32xbf16, #tpu.memory_space<vmem>>, vector<32x32xbf16>
    %cst = arith.constant dense<0.000000e+00> : vector<8x32xf32>
    %9 = tpu.matmul %7, %8, %cst {dimension_numbers = #tpu.dot_dimension_numbers<[1], [0], [0], [1], [0, 0, 1, 1], [], []>} : vector<8x32xbf16>, vector<32x32xbf16>, vector<8x32xf32> -> vector<8x32xf32>
    %10 = vector.extract_strided_slice %9 {offsets = [0, 0], sizes = [8, 8], strides = [1, 1]} : vector<8x32xf32> to vector<8x8xf32>
    %11 = arith.truncf %10 : vector<8x8xf32> to vector<8x8xbf16>
    %c0_4 = arith.constant 0 : index
    %c0_5 = arith.constant 0 : index
    %c0_6 = arith.constant 0 : index
    %12 = vector.load %arg10[%c0_4, %c0_5, %c0_6] : memref<4x8x8xbf16, #tpu.memory_space<vmem>>, vector<1x8x8xbf16>
    %13 = vector.shape_cast %12 : vector<1x8x8xbf16> to vector<8x8xbf16>
    %14 = vector.shape_cast %11 : vector<8x8xbf16> to vector<1x8x8xbf16>
    tpu.vector_store %arg10[%c0_4, %c0_5, %c0_6], %14 {strides = array<i32>} : memref<4x8x8xbf16, #tpu.memory_space<vmem>>, vector<1x8x8xbf16>,
    %15 = vector.extract_strided_slice %9 {offsets = [0, 8], sizes = [8, 8], strides = [1, 1]} : vector<8x32xf32> to vector<8x8xf32>
    %16 = arith.truncf %15 : vector<8x8xf32> to vector<8x8xbf16>
    %c1 = arith.constant 1 : index
    %c0_7 = arith.constant 0 : index
    %c0_8 = arith.constant 0 : index
    %17 = vector.load %arg10[%c1, %c0_7, %c0_8] : memref<4x8x8xbf16, #tpu.memory_space<vmem>>, vector<1x8x8xbf16>
    %18 = vector.shape_cast %17 : vector<1x8x8xbf16> to vector<8x8xbf16>
    %19 = vector.shape_cast %16 : vector<8x8xbf16> to vector<1x8x8xbf16>
    tpu.vector_store %arg10[%c1, %c0_7, %c0_8], %19 {strides = array<i32>} : memref<4x8x8xbf16, #tpu.memory_space<vmem>>, vector<1x8x8xbf16>,
    %20 = vector.extract_strided_slice %9 {offsets = [0, 16], sizes = [8, 8], strides = [1, 1]} : vector<8x32xf32> to vector<8x8xf32>
    %21 = arith.truncf %20 : vector<8x8xf32> to vector<8x8xbf16>
    %c2 = arith.constant 2 : index
    %c0_9 = arith.constant 0 : index
    %c0_10 = arith.constant 0 : index
    %22 = vector.load %arg10[%c2, %c0_9, %c0_10] : memref<4x8x8xbf16, #tpu.memory_space<vmem>>, vector<1x8x8xbf16>
    %23 = vector.shape_cast %22 : vector<1x8x8xbf16> to vector<8x8xbf16>
    %24 = vector.shape_cast %21 : vector<8x8xbf16> to vector<1x8x8xbf16>
    tpu.vector_store %arg10[%c2, %c0_9, %c0_10], %24 {strides = array<i32>} : memref<4x8x8xbf16, #tpu.memory_space<vmem>>, vector<1x8x8xbf16>,
    %25 = vector.extract_strided_slice %9 {offsets = [0, 24], sizes = [8, 8], strides = [1, 1]} : vector<8x32xf32> to vector<8x8xf32>
    %26 = arith.truncf %25 : vector<8x8xf32> to vector<8x8xbf16>
    %c3 = arith.constant 3 : index
    %c0_11 = arith.constant 0 : index
    %c0_12 = arith.constant 0 : index
    %27 = vector.load %arg10[%c3, %c0_11, %c0_12] : memref<4x8x8xbf16, #tpu.memory_space<vmem>>, vector<1x8x8xbf16>
    %28 = vector.shape_cast %27 : vector<1x8x8xbf16> to vector<8x8xbf16>
    %29 = vector.shape_cast %26 : vector<8x8xbf16> to vector<1x8x8xbf16>
    tpu.vector_store %arg10[%c3, %c0_11, %c0_12], %29 {strides = array<i32>} : memref<4x8x8xbf16, #tpu.memory_space<vmem>>, vector<1x8x8xbf16>,
    %c0_13 = arith.constant 0 : index
    %c0_14 = arith.constant 0 : index
    %c0_15 = arith.constant 0 : index
    %30 = vector.load %arg10[%c0_13, %c0_14, %c0_15] : memref<4x8x8xbf16, #tpu.memory_space<vmem>>, vector<4x8x8xbf16>
    %c0_16 = arith.constant 0 : index
    %c0_17 = arith.constant 0 : index
    %c0_18 = arith.constant 0 : index
    %31 = vector.load %arg11[%c0_16, %c0_17, %c0_18] : memref<4x8x8xbf16, #tpu.memory_space<vmem>>, vector<4x8x8xbf16>
    %cst_19 = arith.constant dense<0.000000e+00> : vector<4x8x8xf32>
    %32 = tpu.matmul %30, %31, %cst_19 {dimension_numbers = #tpu.dot_dimension_numbers<[2], [2], [1], [1], [0, 0, 0, 1, 1, 1], [0], [0]>} : vector<4x8x8xbf16>, vector<4x8x8xbf16>, vector<4x8x8xf32> -> vector<4x8x8xf32>
    %c0_20 = arith.constant 0 : index
    %c0_21 = arith.constant 0 : index
    %c0_22 = arith.constant 0 : index
    %33 = vector.load %arg3[%c0_20, %c0_21, %c0_22] : memref<1x8x8xi8, #tpu.memory_space<vmem>>, vector<1x8x8xi8>
    %34 = vector.shape_cast %33 : vector<1x8x8xi8> to vector<8x8xi8>
    %35 = arith.sitofp %34 : vector<8x8xi8> to vector<8x8xf32>
    %cst_23 = arith.constant 0.000000e+00 : f32
    %36 = vector.broadcast %cst_23 : f32 to vector<8x8xf32>
    %37 = arith.cmpf oeq, %35, %36 : vector<8x8xf32>
    %38 = vector.shape_cast %37 : vector<8x8xi1> to vector<1x8x8xi1>
    %cst_24 = arith.constant -1.000000e+09 : f32
    %39 = vector.shape_cast %38 : vector<1x8x8xi1> to vector<1x8x8xi1>
    %40 = vector.broadcast %39 : vector<1x8x8xi1> to vector<4x8x8xi1>
    %41 = vector.broadcast %cst_24 : f32 to vector<4x8x8xf32>
    %42 = arith.select %40, %41, %32 : vector<4x8x8xi1>, vector<4x8x8xf32>
    %cst_25 = arith.constant dense<0xFF800000> : vector<4x8xf32>
    %43 = vector.multi_reduction <maximumf>, %42, %cst_25 [2] : vector<4x8x8xf32> to vector<4x8xf32>
    %44 = vector.shape_cast %43 : vector<4x8xf32> to vector<4x8x1xf32>
    %45 = vector.broadcast %44 : vector<4x8x1xf32> to vector<4x8x8xf32>
    %46 = arith.subf %42, %45 : vector<4x8x8xf32>
    %47 = math.exp %46 : vector<4x8x8xf32>
    %cst_26 = arith.constant dense<0.000000e+00> : vector<4x8xf32>
    %48 = vector.multi_reduction <add>, %47, %cst_26 [2] : vector<4x8x8xf32> to vector<4x8xf32>
    %49 = vector.shape_cast %48 : vector<4x8xf32> to vector<4x8x1xf32>
    %50 = tpu.reciprocal %49 {approx = true} : vector<4x8x1xf32> -> vector<4x8x1xf32>
    %51 = vector.broadcast %50 : vector<4x8x1xf32> to vector<4x8x8xf32>
    %52 = arith.mulf %47, %51 : vector<4x8x8xf32>
    %53 = arith.truncf %52 : vector<4x8x8xf32> to vector<4x8x8xbf16>
    %c0_27 = arith.constant 0 : index
    %c0_28 = arith.constant 0 : index
    %c0_29 = arith.constant 0 : index
    %54 = vector.load %arg12[%c0_27, %c0_28, %c0_29] : memref<4x8x8xbf16, #tpu.memory_space<vmem>>, vector<4x8x8xbf16>
    %cst_30 = arith.constant dense<0.000000e+00> : vector<4x8x8xf32>
    %55 = tpu.matmul %53, %54, %cst_30 {dimension_numbers = #tpu.dot_dimension_numbers<[2], [1], [1], [2], [0, 0, 0, 1, 1, 2], [0], [0]>} : vector<4x8x8xbf16>, vector<4x8x8xbf16>, vector<4x8x8xf32> -> vector<4x8x8xf32>
    %56 = vector.extract_strided_slice %55 {offsets = [0, 0, 0], sizes = [1, 8, 8], strides = [1, 1, 1]} : vector<4x8x8xf32> to vector<1x8x8xf32>
    %57 = vector.shape_cast %56 : vector<1x8x8xf32> to vector<8x8xf32>
    %58 = arith.truncf %57 : vector<8x8xf32> to vector<8x8xbf16>
    %c0_31 = arith.constant 0 : index
    %c0_32 = arith.constant 0 : index
    %59 = vector.load %arg13[%c0_31, %c0_32] : memref<8x32xbf16, #tpu.memory_space<vmem>>, vector<8x8xbf16>
    tpu.vector_store %arg13[%c0_31, %c0_32], %58 {strides = array<i32>} : memref<8x32xbf16, #tpu.memory_space<vmem>>, vector<8x8xbf16>,
    %60 = vector.extract_strided_slice %55 {offsets = [1, 0, 0], sizes = [1, 8, 8], strides = [1, 1, 1]} : vector<4x8x8xf32> to vector<1x8x8xf32>
    %61 = vector.shape_cast %60 : vector<1x8x8xf32> to vector<8x8xf32>
    %62 = arith.truncf %61 : vector<8x8xf32> to vector<8x8xbf16>
    %c0_33 = arith.constant 0 : index
    %c8 = arith.constant 8 : index
    %63 = vector.load %arg13[%c0_33, %c8] : memref<8x32xbf16, #tpu.memory_space<vmem>>, vector<8x8xbf16>
    tpu.vector_store %arg13[%c0_33, %c8], %62 {strides = array<i32>} : memref<8x32xbf16, #tpu.memory_space<vmem>>, vector<8x8xbf16>,
    %64 = vector.extract_strided_slice %55 {offsets = [2, 0, 0], sizes = [1, 8, 8], strides = [1, 1, 1]} : vector<4x8x8xf32> to vector<1x8x8xf32>
    %65 = vector.shape_cast %64 : vector<1x8x8xf32> to vector<8x8xf32>
    %66 = arith.truncf %65 : vector<8x8xf32> to vector<8x8xbf16>
    %c0_34 = arith.constant 0 : index
    %c16 = arith.constant 16 : index
    %67 = vector.load %arg13[%c0_34, %c16] : memref<8x32xbf16, #tpu.memory_space<vmem>>, vector<8x8xbf16>
    tpu.vector_store %arg13[%c0_34, %c16], %66 {strides = array<i32>} : memref<8x32xbf16, #tpu.memory_space<vmem>>, vector<8x8xbf16>,
    %68 = vector.extract_strided_slice %55 {offsets = [3, 0, 0], sizes = [1, 8, 8], strides = [1, 1, 1]} : vector<4x8x8xf32> to vector<1x8x8xf32>
    %69 = vector.shape_cast %68 : vector<1x8x8xf32> to vector<8x8xf32>
    %70 = arith.truncf %69 : vector<8x8xf32> to vector<8x8xbf16>
    %c0_35 = arith.constant 0 : index
    %c24 = arith.constant 24 : index
    %71 = vector.load %arg13[%c0_35, %c24] : memref<8x32xbf16, #tpu.memory_space<vmem>>, vector<8x8xbf16>
    tpu.vector_store %arg13[%c0_35, %c24], %70 {strides = array<i32>} : memref<8x32xbf16, #tpu.memory_space<vmem>>, vector<8x8xbf16>,
    %c0_36 = arith.constant 0 : index
    %c0_37 = arith.constant 0 : index
    %72 = vector.load %arg13[%c0_36, %c0_37] : memref<8x32xbf16, #tpu.memory_space<vmem>>, vector<8x32xbf16>
    %c0_38 = arith.constant 0 : index
    %c0_39 = arith.constant 0 : index
    %73 = vector.load %arg7[%c0_38, %c0_39] : memref<32x32xbf16, #tpu.memory_space<vmem>>, vector<32x32xbf16>
    %cst_40 = arith.constant dense<0.000000e+00> : vector<8x32xf32>
    %74 = tpu.matmul %72, %73, %cst_40 {dimension_numbers = #tpu.dot_dimension_numbers<[1], [0], [0], [1], [0, 0, 1, 1], [], []>} : vector<8x32xbf16>, vector<32x32xbf16>, vector<8x32xf32> -> vector<8x32xf32>
    %c0_41 = arith.constant 0 : index
    %c0_42 = arith.constant 0 : index
    %75 = vector.load %arg8[%c0_41, %c0_42] : memref<1x32xf32, #tpu.memory_space<vmem>>, vector<1x32xf32>
    %76 = vector.broadcast %75 : vector<1x32xf32> to vector<8x32xf32>
    %77 = arith.addf %74, %76 : vector<8x32xf32>
    %c0_43 = arith.constant 0 : index
    %c0_44 = arith.constant 0 : index
    %c0_45 = arith.constant 0 : index
    %78 = vector.load %arg9[%c0_43, %c0_44, %c0_45] : memref<1x8x32xf32, #tpu.memory_space<vmem>>, vector<1x8x32xf32>
    %79 = vector.shape_cast %78 : vector<1x8x32xf32> to vector<8x32xf32>
    %80 = vector.shape_cast %77 : vector<8x32xf32> to vector<1x8x32xf32>
    tpu.vector_store %arg9[%c0_43, %c0_44, %c0_45], %80 {strides = array<i32>} : memref<1x8x32xf32, #tpu.memory_space<vmem>>, vector<1x8x32xf32>,
    return
  }
  func.func @transform_0(%arg0: i32, %arg1: i32) -> (i32, i32, i32) {
    %c0_i32 = arith.constant 0 : i32
    %c0_i32_0 = arith.constant 0 : i32
    %c0_i32_1 = arith.constant 0 : i32
    return %arg0, %c0_i32, %c0_i32_0 : i32, i32, i32
  }
  func.func @transform_1(%arg0: i32, %arg1: i32) -> (i32, i32, i32) {
    %c0_i32 = arith.constant 0 : i32
    %c0_i32_0 = arith.constant 0 : i32
    return %arg0, %arg1, %c0_i32 : i32, i32, i32
  }
  func.func @transform_2(%arg0: i32, %arg1: i32) -> (i32, i32) {
    %c0_i32 = arith.constant 0 : i32
    %c0_i32_0 = arith.constant 0 : i32
    %c0_i32_1 = arith.constant 0 : i32
    return %c0_i32, %c0_i32_0 : i32, i32
  }
  func.func @transform_3(%arg0: i32, %arg1: i32) -> (i32, i32) {
    %c0_i32 = arith.constant 0 : i32
    %c0_i32_0 = arith.constant 0 : i32
    %c0_i32_1 = arith.constant 0 : i32
    return %c0_i32, %c0_i32_0 : i32, i32
  }
  func.func @transform_4(%arg0: i32, %arg1: i32) -> (i32, i32) {
    %c0_i32 = arith.constant 0 : i32
    %c0_i32_0 = arith.constant 0 : i32
    %c0_i32_1 = arith.constant 0 : i32
    return %c0_i32, %c0_i32_0 : i32, i32
  }
  func.func @transform_5(%arg0: i32, %arg1: i32) -> (i32, i32) {
    %c0_i32 = arith.constant 0 : i32
    %c0_i32_0 = arith.constant 0 : i32
    %c0_i32_1 = arith.constant 0 : i32
    return %c0_i32, %c0_i32_0 : i32, i32
  }
  func.func @transform_6(%arg0: i32, %arg1: i32) -> (i32, i32) {
    %c0_i32 = arith.constant 0 : i32
    %c0_i32_0 = arith.constant 0 : i32
    %c0_i32_1 = arith.constant 0 : i32
    return %c0_i32, %c0_i32_0 : i32, i32
  }
  func.func @transform_7(%arg0: i32, %arg1: i32) -> (i32, i32, i32) {
    %c0_i32 = arith.constant 0 : i32
    %c0_i32_0 = arith.constant 0 : i32
    return %arg0, %arg1, %c0_i32 : i32, i32, i32
  }
}

</mosaic_0001>

<bundles_post_ra>
// kernel: tpu_custom_call.1
= control target key start
LH: loop header
LB: loop body
LE: loop exit
PB: predicated region body
PF: predicated region fallthrough
CT: control target
= control target key end

     0   :  { %s2324_s0 = inlined_call_operand.hbm [shape: bf16[2,8,32], index: 0, kind: input, shape index: {}]   ;;  %s2325_s1 = inlined_call_operand.hbm [shape: s8[2,8,8], index: 1, kind: input, shape index: {}]   ;;  %s2326_s2 = inlined_call_operand.hbm [shape: bf16[32,32], index: 2, kind: input, shape index: {}]   ;;  %s2327_s3 = inlined_call_operand.hbm [shape: bf16[32,32], index: 3, kind: input, shape index: {}]   ;;  %s2328_s4 = inlined_call_operand.hbm [shape: bf16[32,32], index: 4, kind: input, shape index: {}]   ;;  %s2329_s5 = inlined_call_operand.hbm [shape: bf16[32,32], index: 5, kind: input, shape index: {}]   ;;  %s2330_s6 = inlined_call_operand.vmem [shape: f32[1,32], index: 6, kind: input, shape index: {}]   ;;  %s2331_s7 = inlined_call_operand.hbm [shape: f32[2,8,32], index: 7, kind: output, shape index: {}]  }
   0x1   :  { %2333 = sst [smem:[#allocation26_spill]] %s2324_s0 }
   0x2   :  { %2334 = sst [smem:[#allocation27_spill]] %s2326_s2 }
   0x3   :  { %2335 = sst [smem:[#allocation28_spill]] %s2327_s3 }
   0x4   :  { %2336 = sst [smem:[#allocation29_spill]] %s2328_s4 }
   0x5   :  { %2337 = sst [smem:[#allocation30_spill]] %s2329_s5 }
   0x6   :  { %12 = vsyncpa [#allocation7], 0 }
   0x7   :  { %14 = vsyncpa [#allocation7 + $0x1], 0 }
   0x8   :  { %15 = vsyncpa [#allocation10], 0 }
   0x9   :  { %17 = vsyncpa [#allocation10 + $0x1], 0 }
   0xa   :  { %18 = vsyncpa [#allocation13], 0 }
   0xb   :  { %19 = vsyncpa [#allocation16], 0 }
   0xc   :  { %20 = vsyncpa [#allocation8], 0 }
   0xd   :  { %22 = vsyncpa [#allocation8 + $0x1], 0  ;;  %s1973_s24 = smov 0   ;;  %s1975_s25 = smov 0  }
   0xe   :  { %s1977_s26 = smov 0   ;;  %s1979_s27 = smov 0  }
   0xf   :  { %s1981_s28 = smov 0   ;;  %s1983_s29 = smov 0  }
  0x10 LB: > { %s2004_s30 = sadd.s32 4294967295, %s1914_s29   ;;  %p1353_p0 = scmp.ge.s32.totalorder %s1914_s29, 1  ;;  %s1914_s29 = sphi %s1983_s29, %s28_s29   ;;  %s1910_s28 = sphi %s1981_s28, %s2359_s28   ;;  %s1906_s27 = sphi %s1979_s27, %s2358_s27   ;;  %s1902_s26 = sphi %s1977_s26, %s2357_s26   ;;  %s1898_s25 = sphi %s1975_s25, %s2356_s25   ;;  %s1894_s24 = sphi %s1973_s24, %s2355_s24  }
  0x11   : > { %p61_p1 = scmp.eq.s32.totalorder %s2004_s30, 0  ;;  %p232_p2 = scmp.lt.s32.totalorder %s1914_s29, 3 }
  0x12   : > { %s1916_s9 = smov [#allocation11]   ;;  %s1917_s12 = smov [#allocation12]  }
  0x13   : > { %p2009_p3 = pnand %p1353_p0, %p232_p2  ;;  %s244_s10 = sshll.u32 %s1916_s9, 4  ;;  %s245_s10 = int_to_ptr.vmem [resolvable:$true] %s244_s10 }
  0x14   : > { %s257_s13 = sshll.u32 %s1917_s12, 4  ;;  %s1918_s14 = smov [#allocation14]   ;;  %s258_s13 = int_to_ptr.vmem [resolvable:$true] %s257_s13 }
  0x15   : > { %p1538_p4 = pneg %p2009_p3  ;;  %s270_s15 = sshll.u32 %s1918_s14, 4  ;;  %s271_s15 = int_to_ptr.vmem [resolvable:$true] %s270_s15 }
  0x16   : > { %s1669_s16 = scalar_lea.vmem %s245_s10, 256  ;;  %p1677_p11 = scmp.lt.s32.totalorder %s245_s10, %s245_s10 }
  0x17   : > { %p2018_p6 = pnand %p1538_p4, %p61_p1  ;;  %p1670_p8 = scmp.ne.s32.totalorder %s245_s10, %s1669_s16 }
  0x18   : > { %p1678_p12 = scmp.lt.s32.totalorder %s1669_s16, %s1669_s16 }
  0x19   : > { %p1660_p7 = pneg %p2018_p6 }
  0x1a   : > { %p1679_p13 = por %p1678_p12, %p1677_p11 }
  0x1b   : > { %p1672_p9 = pnand %p1670_p8, %p1660_p7 }
  0x1d   : > { %p1673_p10 = pneg %p1672_p9 }
  0x1f   : > { %p1680_p0 = pnand %p1679_p13, %p1673_p10 }
  0x21   : > { %1683 = shalt.err (!%p1680_p0)
}
  0x22   : > { %s1919_s17 = smov 64   ;;  %s1920_s18 = smov 4  }
  0x23   : > { %s2340_s2 = sld [smem:[#allocation27_spill]]  ;;  %s1695_s21 = scalar_lea.vmem %s258_s13, 256 }
  0x24   : > { %p1696_p2 = scmp.ne.s32.totalorder %s258_s13, %s1695_s21  ;;  %p1703_p9 = scmp.lt.s32.totalorder %s258_s13, %s258_s13 }
  0x25   : > { %p1704_p10 = scmp.lt.s32.totalorder %s1695_s21, %s1695_s21 }
  0x26   : > { %p1698_p4 = pnand %p1696_p2, %p1660_p7 }
  0x27   : > { %p1705_p11 = por %p1704_p10, %p1703_p9 }
  0x28   : > { %p1699_p8 = pneg %p1698_p4 }
  0x29   : > { %1541 = dma.hbm_to_vmem [thread:$0]  (!%p2018_p6), %s2340_s2, 256, %s245_s10, [#allocation10], %s1919_s17, %s1919_s17, %s1920_s18  }
  0x2a   : > { %p1706_p12 = pnand %p1705_p11, %p1699_p8 }
  0x2c   : > { %1709 = shalt.err (!%p1706_p12)
}
  0x2d   : > { %s2341_s3 = sld [smem:[#allocation28_spill]]  ;;  %s1721_s9 = scalar_lea.vmem %s271_s15, 256 }
  0x2e   : > { %p1722_p13 = scmp.ne.s32.totalorder %s271_s15, %s1721_s9  ;;  %p1729_p4 = scmp.lt.s32.totalorder %s271_s15, %s271_s15 }
  0x2f   : > { %p1730_p8 = scmp.lt.s32.totalorder %s1721_s9, %s1721_s9 }
  0x30   : > { %p1724_p0 = pnand %p1722_p13, %p1660_p7 }
  0x31   : > { %p1731_p9 = por %p1730_p8, %p1729_p4 }
  0x32   : > { %p1725_p2 = pneg %p1724_p0 }
  0x33   : > { %1544 = dma.hbm_to_vmem [thread:$0]  (!%p2018_p6), %s2341_s3, 256, %s258_s13, [#allocation13], %s1919_s17, %s1919_s17, %s1920_s18  }
  0x34   : > { %p1732_p10 = pnand %p1731_p9, %p1725_p2 }
  0x36   : > { %1735 = shalt.err (!%p1732_p10)
}
  0x37   : > { %s2342_s4 = sld [smem:[#allocation29_spill]]  ;;  %s1921_s13 = smov [#allocation15]  }
  0x38   : > { %s283_s14 = sshll.u32 %s1921_s13, 4  ;;  %s284_s14 = int_to_ptr.vmem [resolvable:$true] %s283_s14 }
  0x39   : > { %s1747_s16 = scalar_lea.vmem %s284_s14, 256  ;;  %p1755_p0 = scmp.lt.s32.totalorder %s284_s14, %s284_s14 }
  0x3a   : > { %p1748_p11 = scmp.ne.s32.totalorder %s284_s14, %s1747_s16  ;;  %p1756_p2 = scmp.lt.s32.totalorder %s1747_s16, %s1747_s16 }
  0x3c   : > { %p1750_p12 = pnand %p1748_p11, %p1660_p7  ;;  %p1757_p4 = por %p1756_p2, %p1755_p0 }
  0x3d   : > { %1547 = dma.hbm_to_vmem [thread:$0]  (!%p2018_p6), %s2342_s4, 256, %s271_s15, [#allocation13], %s1919_s17, %s1919_s17, %s1920_s18  }
  0x3e   : > { %p1751_p13 = pneg %p1750_p12 }
  0x40   : > { %p1758_p8 = pnand %p1757_p4, %p1751_p13 }
  0x42   : > { %1761 = shalt.err (!%p1758_p8)
}
  0x43   : > { %s2343_s5 = sld [smem:[#allocation30_spill]]  ;;  %s1352_s11 = sadd.s32 4294967294, %s1914_s29  }
  0x44   : > { %s40_s20 = sadd.s32 1, %s1910_s28  ;;  %s47_s21 = sadd.s32 1, %s1902_s26 }
  0x45   : > { %p42_p7 = scmp.ge.s32.totalorder %s40_s20, 2  ;;  %p54_p9 = scmp.ne.s32.totalorder %s1902_s26, %s1898_s25 }
  0x46   : > { %p55_p10 = scmp.eq.s32.totalorder %s1914_s29, 0  ;;  %p60_p12 = scmp.ne.s32.totalorder %s1898_s25, %s1894_s24 }
  0x47   : > { %s2361_s20 = smov (%p42_p7, %s40_s20), 0  ;;  %p225_p4 = scmp.eq.s32.totalorder %s1352_s11, 1 }
  0x48   : > { %2344 = sst [smem:[#allocation24_spill]] %s2361_s20  ;;  %p2076_p11 = por %p55_p10, %p54_p9 }
  0x49   : > { %1550 = dma.hbm_to_vmem [thread:$0]  (!%p2018_p6), %s2343_s5, 256, %s284_s14, [#allocation16], %s1919_s17, %s1919_s17, %s1920_s18  }
  0x4a   : > { %s44_s17 = ssub.s32 %s1910_s28, %s2361_s20  ;;  %p219_p6 = scmp.eq.s32.totalorder %s2004_s30, 1 }
  0x4b   : > { %p45_p13 = scmp.eq.s32.totalorder %s44_s17, 0  ;;  %p2087_p0 = por %p61_p1, %p60_p12 }
  0x4c   : > { %p2091_p2 = por %p219_p6, %p54_p9  ;;  %p2098_p8 = por %p225_p4, %p60_p12 }
  0x4d   : > { %s2096_s9 = scalar_select %p45_p13, %s1902_s26, %s47_s21  }
  0x4e   : > { %p1566_p7 = scmp.lt.s32.totalorder %s1914_s29, 2  ;;  %s300_s12 = sand.u32 1, %s1902_s26  }
  0x4f   : > { %2348 = sst [smem:[#allocation25_spill]] %s2096_s9  ;;  %s1360_s13 = sshll.u32 %s1910_s28, 6 }
  0x50   : > { %s1359_s14 = sshll.u32 %s300_s12, 2  ;;  %s2350_s0 = sld [smem:[#allocation26_spill]] }
  0x51   : > { %s304_s17 = scalar_lea.vmem [#allocation6], %s1359_s14  ;;  %p2110_p9 = pnand %p1566_p7, %p2076_p11 }
  0x52   : > { %s311_s2 = sshll.u32 %s304_s17, 4  ;;  %s318_s11 = sand.u32 1, %s1914_s29   ;;  %s312_s2 = int_to_ptr.vmem [resolvable:$true] %s311_s2 }
  0x53   : > { %s301_s21 = scalar_lea.sflag [#allocation7], %s300_s12  ;;  %p1764_p10 = pneg %p2110_p9 }
  0x54   : > { %s1775_s4 = scalar_lea.vmem %s312_s2, 64 }
  0x55   : > { %p1776_p12 = scmp.ne.s32.totalorder %s312_s2, %s1775_s4 }
  0x56   : > { %s309_s19 = scalar_lea.hbm %s2350_s0, %s1360_s13  ;;  %s1922_s13 = smov [#allocation6]  }
  0x57   : > { %p1778_p6 = pnand %p1776_p12, %p1764_p10  ;;  %s1780_s14 = sshll.u32 %s1922_s13, 4  ;;  %s1781_s14 = int_to_ptr.vmem [resolvable:$false] %s1780_s14 }
  0x58   : > { %s1782_s22 = scalar_lea.vmem %s1781_s14, 128  ;;  %p1783_p11 = scmp.lt.s32.totalorder %s312_s2, %s1781_s14 }
  0x59   : > { %p1779_p13 = pneg %p1778_p6  ;;  %p1784_p4 = scmp.lt.s32.totalorder %s1782_s22, %s1775_s4 }
  0x5b   : > { %p1785_p7 = por %p1784_p4, %p1783_p11 }
  0x5d   : > { %p1786_p5 = pnand %p1785_p7, %p1779_p13 }
  0x5f   : > { %1789 = shalt.err (!%p1786_p5)
}
  0x60   : > { %1554 = dma.hbm_to_vmem [thread:$0]  (!%p2110_p9), %s309_s19, 64, %s312_s2, %s301_s21  }
  0x61   : > { %s1361_s16 = sshll.u32 %s300_s12, 1  ;;  %s1362_s15 = sshll.u32 %s1910_s28, 5 }
  0x62   : > { %s328_s5 = scalar_lea.hbm %s2325_s1, %s1362_s15  ;;  %s322_s20 = scalar_lea.vmem [#allocation9], %s1361_s16 }
  0x63   : > { %s330_s13 = sshll.u32 %s322_s20, 4  ;;  %s319_s9 = scalar_lea.sflag [#allocation10], %s318_s11  ;;  %s331_s13 = int_to_ptr.vmem [resolvable:$true] %s330_s13 }
  0x64   : > { %s1803_s14 = scalar_lea.vmem %s331_s13, 32  ;;  %s1923_s4 = smov [#allocation9]  }
  0x65   : > { %p1804_p12 = scmp.ne.s32.totalorder %s331_s13, %s1803_s14  ;;  %s1808_s22 = sshll.u32 %s1923_s4, 4  ;;  %s1809_s22 = int_to_ptr.vmem [resolvable:$false] %s1808_s22 }
  0x66   : > { %s1810_s2 = scalar_lea.vmem %s1809_s22, 64  ;;  %p1811_p13 = scmp.lt.s32.totalorder %s331_s13, %s1809_s22 }
  0x67   : > { %p1806_p5 = pnand %p1804_p12, %p1764_p10  ;;  %p1812_p11 = scmp.lt.s32.totalorder %s1810_s2, %s1803_s14 }
  0x69   : > { %p1807_p6 = pneg %p1806_p5  ;;  %p1813_p4 = por %p1812_p11, %p1811_p13 }
  0x6b   : > { %p1814_p7 = pnand %p1813_p4, %p1807_p6 }
  0x6d   : > { %1817 = shalt.err (!%p1814_p7)
}
  0x6e   : > { %1557 = dma.hbm_to_vmem [thread:$0]  (!%p2110_p9), %s328_s5, 32, %s331_s13, %s319_s9  }
  0x6f   : > { %339 = sbr.rel (%p2009_p3) target bundleno = 1505 (0x5e1), region = 48  ;;  %s2134_s0 = sand.u32 (!%p2009_p3), 1, %s1898_s25  }
  0x70   : > { %s1364_s20 = sshll.u32 (!%p2009_p3), %s2134_s0, 2  ;;  %s342_s12 = scalar_lea.sflag (!%p2009_p3), [#allocation7], %s2134_s0 }
  0x71   : > { %s2138_s19 = scalar_lea.vmem (!%p2009_p3), [#allocation6], %s1364_s20 }
  0x74   : > { %1869 = dma.done.wait (%p2087_p0), %s342_s12, 64  }
  0x75   : > { %1871 = vsyncadd (%p2087_p0), %s342_s12, 4294967232  ;;  %s350_s3 = sand.u32 1, %s2004_s30   ;;  %s1365_s5 = sshll.u32 %s2134_s0, 1 }
  0x76   : > { %s351_s8 = scalar_lea.sflag [#allocation10], %s350_s3  ;;  %s2146_s9 = scalar_lea.vmem [#allocation9], %s1365_s5 }
  0x77   : > { %1873 = dma.done.wait (%p2087_p0), %s351_s8, 32  }
  0x78   : > { %1875 = vsyncadd (%p2087_p0), %s351_s8, 4294967264 }
  0x79   : > { %1877 = dma.done.wait (%p61_p1), [#allocation10], 256  }
  0x7a   : > { %1879 = vsyncadd (%p61_p1), [#allocation10], 4294967040 }
  0x7b   : > { %1881 = dma.done.wait (%p61_p1), [#allocation13], 512  }
  0x7c   : > { %1883 = vsyncadd (%p61_p1), [#allocation13], 4294966784 }
  0x7d   : > { %1885 = dma.done.wait (%p61_p1), [#allocation16], 256  }
  0x7e   : > { %1887 = vsyncadd (%p61_p1), [#allocation16], 4294967040  ;;  %v1924_v0 = vmov 0.0   ;;  %vm1925_vm0 = vmmov 0   ;;  %v1634_v1 = vld [vmem:[#allocation12 + $0x8] sm:$0xff]   ;;  %v1635_v2 = vld [vmem:[#allocation12] sm:$0xff]  }
  0x7f   : > { %1436 = vmatprep.subr.bf16.mxu0 %v1924_v0  ;;  %1440 = vmatprep.mubr.msk.bf16.mxu0 %vm1925_vm0, %v1924_v0  ;;  %v411_v3 = vld [vmem:[%s2138_s19] sm:$0xf]  ;;  %vm428_vm1 = vcmask 261120   ;;  %v1636_v4 = vld [vmem:[#allocation11 + $0x8] sm:$0xff]   ;;  %v1637_v5 = vld [vmem:[#allocation11] sm:$0xff]   ;;  %vm529_vm2 = vcmask 60416  }
  0x80   : > { %1444 = vmatprep.subr.bf16.mxu1 %v1924_v0  ;;  %1448 = vmatprep.mubr.msk.bf16.mxu1 %vm1925_vm0, %v1924_v0  ;;  %v574_v6 = vld [vmem:[%s2138_s19] sm:$0xf]  ;;  %v1638_v7 = vld [vmem:[#allocation14 + $0x8] sm:$0xff]   ;;  %v1639_v8 = vld [vmem:[#allocation14] sm:$0xff]   ;;  %s1926_s30 = smov 104   ;;  %s1927_s18 = smov 120  }
  0x81   : > { %1437 = vmatpush3.bf16.msra.mxu0 %v1634_v1  ;;  %1445 = vmatpush3.bf16.msra.mxu1 %v1638_v7  ;;  %s1928_s11 = smov 112   ;;  %vm664_vm3 = vcmask 64512   ;;  %vm914_vm4 = vcmask 1043456   ;;  %v849_v44 = vld [vmem:[%s2146_s9] sm:$0x3]  ;;  %s1929_s21 = smov 8  }
  0x82   : > { %1438 = vmatprep.subr.bf16.mxu0 %v1924_v0  ;;  %1446 = vmatprep.subr.bf16.mxu1 %v1924_v0  ;;  %v850_v45 = vunpack.c.0.s8 %v849_v44  ;;  %s1930_s16 = smov 16   ;;  %s1931_s15 = smov 24   ;;  %vm1105_vm6 = vcmask 126016   ;;  %vm1114_vm7 = vcmask 191616   ;;  %vm1123_vm8 = vcmask 257216  }
  0x83   : > { %s1370_s17 = sshll.u32 %s2134_s0, 3  ;;  %s1399_s4 = sshll.u32 %s1906_s27, 7 }
  0x84   : > { %v851_v46 = vcvt.s32.f32 %v850_v45  ;;  %s405_s22 = scalar_lea.vmem [#allocation17], %s1370_s17  ;;  %s2275_s19 = scalar_lea.hbm %s2331_s7, %s1399_s4 }
  0x85   : > { %1439 = vmatpush3.bf16.msra.mxu0 %v1635_v2  ;;  %1447 = vmatpush3.bf16.msra.mxu1 %v1639_v8  ;;  %s1208_s2 = sshll.u32 %s405_s22, 4  ;;  %s1194_s3 = scalar_lea.sflag [#allocation8], %s2134_s0  ;;  %s2277_s2 = int_to_ptr.vmem [resolvable:$true] %s1208_s2 }
  0x86   : > { %1452 = vmatprep.subr.bf16.mxu0 %v1924_v0  ;;  %1460 = vmatprep.subr.bf16.mxu1 %v1924_v0  ;;  %vm852_vm5 = vcmp.eq.f32.partialorder %v851_v46, 0.0  ;;  %s1818_s27 = scalar_lea.vmem %s2277_s2, 128  ;;  %s1932_s5 = smov [#allocation17]  }
  0x87   : > { %p1819_p1 = scmp.ne.s32.totalorder %s2277_s2, %s1818_s27  ;;  %s1822_s8 = sshll.u32 %s1932_s5, 4  ;;  %s1823_s8 = int_to_ptr.vmem [resolvable:$false] %s1822_s8 }
  0x88   : > { %1441 = vmatmul.mubr.msk.bf16.vlgmr.msra.gmra.mxu0 %vm428_vm1, %v411_v3  ;;  %1449 = vmatmul.mubr.msk.bf16.vlgmr.msra.gmra.mxu1 %vm428_vm1, %v411_v3  ;;  %s1824_s9 = scalar_lea.vmem %s1823_s8, 256  ;;  %p1825_p9 = scmp.lt.s32.totalorder %s2277_s2, %s1823_s8 }
  0x89   : > { %1453 = vmatpush3.bf16.msra.mxu0 %v1636_v4  ;;  %1456 = vmatprep.mubr.msk.bf16.mxu0 %vm1925_vm0, %v1924_v0  ;;  %p1820_p3 = pnand %p1819_p1, %p2091_p2  ;;  %p1826_p10 = scmp.lt.s32.totalorder %s1824_s9, %s1818_s27 }
  0x8a   : > { %1454 = vmatprep.subr.bf16.mxu0 %v1924_v0  ;;  %1462 = vmatprep.mubr.msk.bf16.mxu1 %vm1925_vm0, %v1924_v0 }
  0x8b   : > { %p1821_p0 = pneg %p1820_p3  ;;  %p1827_p12 = por %p1826_p10, %p1825_p9 }
  0x8d   : > { %1455 = vmatpush3.bf16.msra.mxu0 %v1637_v5  ;;  %p1828_p5 = pnand %p1827_p12, %p1821_p0 }
  0x8e   : > { %1466 = vmatprep.subr.bf16.mxu0 %v1924_v0 }
  0x90   : > { %1457 = vmatmul.mubr.msk.bf16.vlgmr.msra.gmra.mxu0 %vm428_vm1, %v574_v6 }
  0x91   : > { %1468 = vmatprep.mubr.msk.bf16.mxu0 %vm1925_vm0, %v1924_v0 }
 0x148   : > { %v466_v9 = vpop.f32.mrf.mxu0  ;;  %v522_v22 = vpop.f32.mrf.mxu1 }
 0x149   : > { %v528_v10 = vpack.c.bf16 %v466_v9, %v466_v9  ;;  %v2200_v23 = vpack.c.bf16 %v522_v22, %v522_v22 }
 0x14a   : > { %v1442_v11 = vpop.f32.mrf.mxu0  ;;  %v1450_v24 = vpop.f32.mrf.mxu1 }
 0x14b   : > { %530 = vst.msk [vmem:[#allocation3] sm:$0xf] %vm529_vm2, %v528_v10  ;;  %559 = vrot.lane.b32.xlu1 %v528_v10, %s1926_s30  ;;  %536 = vrot.lane.b32.xlu0 %v528_v10, %s1927_s18  ;;  %532 = vst.msk [vmem:[#allocation4] sm:$0xf] %vm529_vm2, %v2200_v23 }
 0x14c   : > { %v469_v12 = vpop.f32.mrf.mxu0  ;;  %v525_v25 = vpop.f32.mrf.mxu1 }
 0x14e   : > { %v1443_v13 = vpop.f32.mrf.mxu0  ;;  %v1451_v26 = vpop.f32.mrf.mxu1 }
 0x14f   : > { %549 = vrot.lane.b32.xlu0 %v528_v10, %s1928_s11 }
 0x150   : > { %v629_v14 = vpop.f32.mrf.mxu0 }
 0x151   : > { %v635_v15 = vpack.c.bf16 %v629_v14, %v629_v14 }
 0x152   : > { %v1458_v16 = vpop.f32.mrf.mxu0  ;;  %v660_v17 = vld [vmem:[#allocation3] sm:$0xf]  ;;  %v907_v42 = vld [vmem:[#allocation4] sm:$0xf] }
 0x153   : > { %637 = vst.msk [vmem:[#allocation2] sm:$0xf] %vm529_vm2, %v635_v15  ;;  %646 = vrot.lane.b32.xlu0 %v635_v15, %s1928_s11  ;;  %641 = vrot.lane.b32.xlu1 %v635_v15, %s1927_s18  ;;  %v669_v18 = vsel %vm664_vm3, %v660_v17, 0  ;;  %v916_v43 = vsel %vm914_vm4, %v907_v42, 0 }
 0x154   : > { %v632_v19 = vpop.f32.mrf.mxu0  ;;  %1461 = vmatpush3.bf16.xpose.msra.mxu1 %v669_v18 }
 0x155   : > { %1472 = vmatprep.subr.bf16.mxu1 %v1924_v0 }
 0x156   : > { %v1459_v20 = vpop.f32.mrf.mxu0 }
 0x157   : > { %651 = vrot.lane.b32.xlu1 %v635_v15, %s1926_s30 }
 0x15a   : > { %v656_v21 = vld [vmem:[#allocation2] sm:$0xf] }
 0x15b   : > { %1463 = vmatmul.mubr.msk.bf16.vlgmr.msra.gmra.mxu1 %vm664_vm3, %v656_v21 }
 0x15c   : > { %1474 = vmatprep.mubr.msk.bf16.mxu1 %vm1925_vm0, %v1924_v0 }
 0x1bd   : > { %v560_v27 = vpop.permute.xlu1 %559  ;;  %v537_v28 = vpop.permute.xlu0 %536 }
 0x1be   : > { %563 = vst.msk [vmem:[#allocation3 + $0xc] sm:$0xf] %vm529_vm2, %v560_v27  ;;  %540 = vst.msk [vmem:[#allocation3 + $0x4] sm:$0xf] %vm529_vm2, %v537_v28 }
 0x1c1   : > { %v550_v29 = vpop.permute.xlu0 %549 }
 0x1c2   : > { %553 = vst.msk [vmem:[#allocation3 + $0x8] sm:$0xf] %vm529_vm2, %v550_v29 }
 0x1c5   : > { %v647_v30 = vpop.permute.xlu0 %646  ;;  %v642_v31 = vpop.permute.xlu1 %641  ;;  %v661_v32 = vld [vmem:[#allocation3 + $0x4] sm:$0xf]  ;;  %v663_v37 = vld [vmem:[#allocation3 + $0xc] sm:$0xf] }
 0x1c6   : > { %650 = vst.msk [vmem:[#allocation2 + $0x8] sm:$0xf] %vm529_vm2, %v647_v30  ;;  %645 = vst.msk [vmem:[#allocation2 + $0x4] sm:$0xf] %vm529_vm2, %v642_v31  ;;  %v715_v33 = vsel %vm664_vm3, %v661_v32, 0  ;;  %v807_v39 = vsel %vm664_vm3, %v663_v37, 0 }
 0x1c7   : > { %1467 = vmatpush3.bf16.xpose.msra.mxu0 %v715_v33 }
 0x1c8   : > { %1478 = vmatprep.subr.bf16.mxu0 %v1924_v0 }
 0x1c9   : > { %v652_v34 = vpop.permute.xlu1 %651  ;;  %v662_v35 = vld [vmem:[#allocation3 + $0x8] sm:$0xf] }
 0x1ca   : > { %655 = vst.msk [vmem:[#allocation2 + $0xc] sm:$0xf] %vm529_vm2, %v652_v34  ;;  %v761_v36 = vsel %vm664_vm3, %v662_v35, 0 }
 0x1cb   : > { %1473 = vmatpush3.bf16.xpose.msra.mxu1 %v761_v36 }
 0x1cc   : > { %1484 = vmatprep.subr.bf16.mxu1 %v1924_v0 }
 0x1cd   : > { %v657_v38 = vld [vmem:[#allocation2 + $0x4] sm:$0xf]  ;;  %v658_v40 = vld [vmem:[#allocation2 + $0x8] sm:$0xf] }
 0x1ce   : > { %1469 = vmatmul.mubr.msk.bf16.vlgmr.msra.gmra.mxu0 %vm664_vm3, %v657_v38 }
 0x1cf   : > { %1479 = vmatpush3.bf16.xpose.msra.mxu0 %v807_v39  ;;  %1480 = vmatprep.mubr.msk.bf16.mxu0 %vm1925_vm0, %v1924_v0 }
 0x1d0   : > { %1490 = vmatprep.subr.bf16.mxu0 %v1924_v0 }
 0x1d1   : > { %v659_v41 = vld [vmem:[#allocation2 + $0xc] sm:$0xf] }
 0x1d2   : > { %1475 = vmatmul.mubr.msk.bf16.vlgmr.msra.gmra.mxu1 %vm664_vm3, %v658_v40 }
 0x1d3   : > { %1486 = vmatprep.mubr.msk.bf16.mxu1 %vm1925_vm0, %v1924_v0  ;;  %1485 = vmatpush3.bf16.msra.mxu1 %v916_v43 }
 0x1d4   : > { %1496 = vmatprep.subr.bf16.mxu1 %v1924_v0 }
 0x1d6   : > { %1481 = vmatmul.mubr.msk.bf16.vlgmr.msra.gmra.mxu0 %vm664_vm3, %v659_v41 }
 0x1d7   : > { %1492 = vmatprep.mubr.msk.bf16.mxu0 %vm1925_vm0, %v1924_v0 }
 0x21b   : > { %v705_v47 = vpop.f32.mrf.mxu1 }
 0x21c   : > { %v855_v48 = vsel %vm852_vm5, -1e+09, %v705_v47 }
 0x21d   : > { %v1464_v49 = vpop.f32.mrf.mxu1  ;;  %v859_v50 = vsel %vm664_vm3, %v855_v48, -inf }
 0x21e   : > { %860 = vmax.xlane.f32.xlu0 %v859_v50 }
 0x21f   : > { %v708_v51 = vpop.f32.mrf.mxu1 }
 0x221   : > { %v1465_v52 = vpop.f32.mrf.mxu1 }
 0x28e   : > { %v751_v53 = vpop.f32.mrf.mxu0 }
 0x28f   : > { %v856_v54 = vsel %vm852_vm5, -1e+09, %v751_v53 }
 0x290   : > { %v1470_v55 = vpop.f32.mrf.mxu0  ;;  %v862_v56 = vsel %vm664_vm3, %v856_v54, -inf }
 0x291   : > { %863 = vmax.xlane.f32.xlu1 %v862_v56 }
 0x292   : > { %v754_v57 = vpop.f32.mrf.mxu0  ;;  %v797_v58 = vpop.f32.mrf.mxu1 }
 0x293   : > { %v857_v59 = vsel %vm852_vm5, -1e+09, %v797_v58  ;;  %v1640_v58 = vld [vmem:[#allocation15 + $0x8] sm:$0xff]  }
 0x294   : > { %v1471_v60 = vpop.f32.mrf.mxu0  ;;  %v1476_v61 = vpop.f32.mrf.mxu1  ;;  %v865_v62 = vsel %vm664_vm3, %v857_v59, -inf }
 0x295   : > { %866 = vmax.xlane.f32.xlu0 %v865_v62  ;;  %v1641_v60 = vld [vmem:[#allocation15] sm:$0xff]  }
 0x296   : > { %v800_v63 = vpop.f32.mrf.mxu1  ;;  %v843_v1 = vpop.f32.mrf.mxu0 }
 0x297   : > { %v858_v2 = vsel %vm852_vm5, -1e+09, %v843_v1 }
 0x298   : > { %v1477_v3 = vpop.f32.mrf.mxu1  ;;  %v1482_v4 = vpop.f32.mrf.mxu0  ;;  %v868_v5 = vsel %vm664_vm3, %v858_v2, -inf }
 0x299   : > { %869 = vmax.xlane.f32.xlu0 %v868_v5 }
 0x29a   : > { %v846_v6 = vpop.f32.mrf.mxu0 }
 0x29c   : > { %v1483_v7 = vpop.f32.mrf.mxu0 }
 0x2a2   : > { %544 = vrot.lane.b32.xlu1 %v2200_v23, %s1927_s18 }
 0x2a7   : > { %v861_v8 = vpop.xlane.xlu0 %860 }
 0x2a8   : > { %v871_v9 = vsub.f32 %v855_v48, %v861_v8 }
 0x2aa   : > { %v875_v10 = vmul.f32 1.442695, %v871_v9 }
 0x2ac   : > { %1642 = vpow2.f32 %v875_v10 }
 0x2b9   : > { %v1643_v11 = vpop.eup %1642 }
 0x2ba   : > { %v883_v12 = vsel %vm664_vm3, %v1643_v11, 0.0 }
 0x2c6   : > { %884 = vadd.xlane.f32.xlu1 %v883_v12 }
 0x31a   : > { %v864_v13 = vpop.xlane.xlu1 %863 }
 0x31b   : > { %v872_v14 = vsub.f32 %v856_v54, %v864_v13 }
 0x31d   : > { %v877_v15 = vmul.f32 1.442695, %v872_v14 }
 0x31e   : > { %v867_v16 = vpop.xlane.xlu0 %866  ;;  %v545_v17 = vpop.permute.xlu1 %544 }
 0x31f   : > { %1644 = vpow2.f32 %v877_v15  ;;  %v873_v18 = vsub.f32 %v857_v59, %v867_v16  ;;  %548 = vst.msk [vmem:[#allocation4 + $0x4] sm:$0xf] %vm529_vm2, %v545_v17  ;;  %v1394_v15 = vld [vmem:[%s2330_s6] ss:$0 sm:$0xff] }
 0x321   : > { %v879_v19 = vmul.f32 1.442695, %v873_v18 }
 0x322   : > { %v870_v20 = vpop.xlane.xlu0 %869 }
 0x323   : > { %1646 = vpow2.f32 %v879_v19  ;;  %v874_v21 = vsub.f32 %v858_v2, %v870_v20 }
 0x325   : > { %v881_v22 = vmul.f32 1.442695, %v874_v21 }
 0x326   : > { %v908_v24 = vld [vmem:[#allocation4 + $0x4] sm:$0xf] }
 0x327   : > { %1648 = vpow2.f32 %v881_v22  ;;  %v962_v25 = vsel %vm914_vm4, %v908_v24, 0 }
 0x328   : > { %1491 = vmatpush3.bf16.msra.mxu0 %v962_v25 }
 0x329   : > { %1502 = vmatprep.subr.bf16.mxu0 %v1924_v0 }
 0x32c   : > { %v1645_v26 = vpop.eup %1644 }
 0x32d   : > { %v886_v27 = vsel %vm664_vm3, %v1645_v26, 0.0 }
 0x32e   : > { %887 = vadd.xlane.f32.xlu0 %v886_v27 }
 0x330   : > { %v1647_v28 = vpop.eup %1646 }
 0x331   : > { %v889_v29 = vsel %vm664_vm3, %v1647_v28, 0.0 }
 0x332   : > { %890 = vadd.xlane.f32.xlu1 %v889_v29 }
 0x334   : > { %v1649_v30 = vpop.eup %1648 }
 0x335   : > { %v892_v31 = vsel %vm664_vm3, %v1649_v30, 0.0 }
 0x336   : > { %893 = vadd.xlane.f32.xlu0 %v892_v31 }
 0x343   : > { %564 = vrot.lane.b32.xlu1 %v2200_v23, %s1926_s30 }
 0x34c   : > { %554 = vrot.lane.b32.xlu0 %v2200_v23, %s1928_s11 }
 0x34f   : > { %v885_v32 = vpop.xlane.xlu1 %884 }
 0x350   : > { %1650 = vrcp.f32 %v885_v32 }
 0x35d   : > { %v1651_v33 = vpop.eup %1650 }
 0x35e   : > { %v899_v34 = vmul.f32 %v1651_v33, %v1643_v11 }
 0x360   : > { %v903_v35 = vpack.c.bf16 %v899_v34, %v899_v34 }
 0x362   : > { %1487 = vmatmul.mubr.msk.bf16.vlgmr.msra.gmra.mxu1 %vm664_vm3, %v903_v35 }
 0x363   : > { %1498 = vmatprep.mubr.msk.bf16.mxu1 %vm1925_vm0, %v1924_v0 }
 0x3b7   : > { %v888_v36 = vpop.xlane.xlu0 %887 }
 0x3b8   : > { %1652 = vrcp.f32 %v888_v36 }
 0x3bb   : > { %v891_v37 = vpop.xlane.xlu1 %890 }
 0x3bc   : > { %1654 = vrcp.f32 %v891_v37 }
 0x3bf   : > { %v565_v38 = vpop.permute.xlu1 %564  ;;  %v894_v39 = vpop.xlane.xlu0 %893 }
 0x3c0   : > { %568 = vst.msk [vmem:[#allocation4 + $0xc] sm:$0xf] %vm529_vm2, %v565_v38  ;;  %1656 = vrcp.f32 %v894_v39 }
 0x3c3   : > { %v555_v23 = vpop.permute.xlu0 %554 }
 0x3c4   : > { %558 = vst.msk [vmem:[#allocation4 + $0x8] sm:$0xf] %vm529_vm2, %v555_v23 }
 0x3c5   : > { %v1653_v40 = vpop.eup %1652 }
 0x3c6   : > { %v900_v41 = vmul.f32 %v1653_v40, %v1645_v26 }
 0x3c7   : > { %v910_v42 = vld [vmem:[#allocation4 + $0xc] sm:$0xf] }
 0x3c8   : > { %v904_v43 = vpack.c.bf16 %v900_v41, %v900_v41  ;;  %v1054_v44 = vsel %vm914_vm4, %v910_v42, 0 }
 0x3c9   : > { %v1655_v45 = vpop.eup %1654 }
 0x3ca   : > { %1493 = vmatmul.mubr.msk.bf16.vlgmr.msra.gmra.mxu0 %vm664_vm3, %v904_v43  ;;  %v901_v46 = vmul.f32 %v1655_v45, %v1647_v28 }
 0x3cb   : > { %1503 = vmatpush3.bf16.msra.mxu0 %v1054_v44  ;;  %v909_v47 = vld [vmem:[#allocation4 + $0x8] sm:$0xf]  ;;  %1504 = vmatprep.mubr.msk.bf16.mxu0 %vm1925_vm0, %v1924_v0 }
 0x3cc   : > { %v1008_v48 = vsel %vm914_vm4, %v909_v47, 0  ;;  %v905_v50 = vpack.c.bf16 %v901_v46, %v901_v46 }
 0x3cd   : > { %v1657_v49 = vpop.eup %1656  ;;  %1497 = vmatpush3.bf16.msra.mxu1 %v1008_v48 }
 0x3ce   : > { %v902_v51 = vmul.f32 %v1657_v49, %v1649_v30  ;;  %1508 = vmatprep.subr.bf16.mxu1 %v1924_v0 }
 0x3d0   : > { %1499 = vmatmul.mubr.msk.bf16.vlgmr.msra.gmra.mxu1 %vm664_vm3, %v905_v50  ;;  %v906_v52 = vpack.c.bf16 %v902_v51, %v902_v51 }
 0x3d1   : > { %1512 = vmatprep.mubr.msk.bf16.mxu1 %vm1925_vm0, %v1924_v0  ;;  %1509 = vmatpush3.bf16.msra.mxu1 %v1640_v58 }
 0x3d2   : > { %1505 = vmatmul.mubr.msk.bf16.vlgmr.msra.gmra.mxu0 %vm664_vm3, %v906_v52  ;;  %1510 = vmatprep.subr.bf16.mxu1 %v1924_v0 }
 0x3d5   : > { %1511 = vmatpush3.bf16.msra.mxu1 %v1641_v60 }
 0x422   : > { %v952_v53 = vpop.f32.mrf.mxu1 }
 0x423   : > { %v1096_v54 = vpack.c.bf16 %v952_v53, %v952_v53 }
 0x424   : > { %v1488_v55 = vpop.f32.mrf.mxu1 }
 0x425   : > { %1097 = vst.msk [vmem:[#allocation5] sm:$0xf] %vm529_vm2, %v1096_v54 }
 0x426   : > { %v955_v56 = vpop.f32.mrf.mxu1 }
 0x428   : > { %v1489_v57 = vpop.f32.mrf.mxu1 }
 0x48a   : > { %v998_v59 = vpop.f32.mrf.mxu0 }
 0x48b   : > { %v1405_v61 = vpack.c.bf16 %v998_v59, %v998_v59 }
 0x48c   : > { %v1494_v62 = vpop.f32.mrf.mxu0 }
 0x48d   : > { %1102 = vrot.lane.b32.xlu1 %v1405_v61, %s1929_s21 }
 0x48e   : > { %v1001_v63 = vpop.f32.mrf.mxu0 }
 0x490   : > { %v1495_v1 = vpop.f32.mrf.mxu0  ;;  %v1044_v2 = vpop.f32.mrf.mxu1 }
 0x491   : > { %v1406_v3 = vpack.c.bf16 %v1044_v2, %v1044_v2 }
 0x492   : > { %v1500_v4 = vpop.f32.mrf.mxu1  ;;  %v1090_v5 = vpop.f32.mrf.mxu0 }
 0x493   : > { %v1407_v6 = vpack.c.bf16 %v1090_v5, %v1090_v5  ;;  %1111 = vrot.lane.b32.xlu0 %v1406_v3, %s1930_s16 }
 0x494   : > { %v1047_v7 = vpop.f32.mrf.mxu1  ;;  %v1506_v8 = vpop.f32.mrf.mxu0 }
 0x495   : > { %1120 = vrot.lane.b32.xlu1 %v1407_v6, %s1931_s15 }
 0x496   : > { %v1501_v9 = vpop.f32.mrf.mxu1  ;;  %v1093_v0 = vpop.f32.mrf.mxu0 }
 0x498   : > { %v1507_v10 = vpop.f32.mrf.mxu0 }
 0x4ff   : > { %v1103_v11 = vpop.permute.xlu1 %1102 }
 0x500   : > { %1106 = vst.msk [vmem:[#allocation5] sm:$0xf] %vm1105_vm6, %v1103_v11 }
 0x505   : > { %v1112_v12 = vpop.permute.xlu0 %1111 }
 0x506   : > { %1115 = vst.msk [vmem:[#allocation5] sm:$0xf] %vm1114_vm7, %v1112_v12 }
 0x507   : > { %v1121_v13 = vpop.permute.xlu1 %1120 }
 0x508   : > { %1124 = vst.msk [vmem:[#allocation5] sm:$0xf] %vm1123_vm8, %v1121_v13 }
 0x50f   : > { %v1125_v14 = vld [vmem:[#allocation5] sm:$0xf] }
 0x510   : > { %1513 = vmatmul.mubr.msk.bf16.vlgmr.msra.gmra.mxu1 %vm428_vm1, %v1125_v14 }
 0x5d0   : > { %v1186_v16 = vpop.f32.mrf.mxu1 }
 0x5d1   : > { %v1187_v17 = vadd.f32 %v1394_v15, %v1186_v16 }
 0x5d2   : > { %v1514_v18 = vpop.f32.mrf.mxu1 }
 0x5d3   : > { %1192 = vst.msk [vmem:[%s405_s22] sm:$0xff] %vm428_vm1, %v1187_v17 }
 0x5d4   : > { %v1189_v19 = vpop.f32.mrf.mxu1 }
 0x5d5   : > { %1831 = shalt.err (!%p1828_p5)
}
 0x5d6   : > { %s1832_s30 = scalar_lea.hbm %s2275_s19, 128  ;;  %s1836_s11 = scalar_lea.hbm %s2331_s7, 256 }
 0x5d7   : > { %p1833_p6 = scmp.ne.s32.totalorder %s2275_s19, %s1832_s30  ;;  %p1837_p4 = scmp.lt.s32.totalorder %s2275_s19, %s2331_s7 }
 0x5d8   : > { %p1838_p7 = scmp.lt.s32.totalorder %s1836_s11, %s1832_s30 }
 0x5d9   : > { %p1834_p13 = pnand %p1833_p6, %p2091_p2 }
 0x5da   : > { %p1839_p1 = por %p1838_p7, %p1837_p4 }
 0x5db   : > { %p1835_p11 = pneg %p1834_p13 }
 0x5dd   : > { %p1840_p3 = pnand %p1839_p1, %p1835_p11 }
 0x5df   : > { %1843 = shalt.err (!%p1840_p3)
}
 0x5e0   : > { %1536 = dma.vmem_to_hbm [thread:$0]  (%p2091_p2), %s2277_s2, 128, %s2275_s19, %s1194_s3   ;;  %v1515_v20 = vpop.f32.mrf.mxu1 }
 0x5e1 PF: > { %s1220_s15 = sand.u32 1, %s1894_s24   ;;  %p2352_p0 = scmp.ge.s32.totalorder %s1914_s29, 2 }
 0x5e2   : > { %s1221_s17 = scalar_lea.sflag [#allocation8], %s1220_s15 }
 0x5e3   : > { %p1559_p9 = pnand %p2352_p0, %p2098_p8 }
 0x5e5   : > { %p1560_p10 = pneg %p1559_p9 }
 0x5e7   : > { %1889 = dma.done.wait (%p1560_p10), %s1221_s17, 128  }
 0x5e8   : > { %1891 = vsyncadd (%p1560_p10), %s1221_s17, 4294967168  ;;  %s28_s29 = sadd.s32 1, %s1914_s29   ;;  %s2353_s23 = sld [smem:[#allocation25_spill]] }
 0x5e9   : > { %p25_p12 = scmp.ge.s32.totalorder %s28_s29, 4   ;;  %s2354_s13 = sld [smem:[#allocation24_spill]] }
 0x5ea   : > { %s2355_s24 = smov %s1898_s25  ;;  %s2356_s25 = smov %s1902_s26 }
 0x5eb   : > { %s2358_s27 = smov %s1910_s28  ;;  %27 = sbr.rel (!%p25_p12) target bundleno = 16 (0x10), region = 136 }
 0x5ee   : > { %s2357_s26 = smov %s2353_s23 }
 0x5ef   : > { %s2359_s28 = smov %s2354_s13 }
 0x5f0   :  { %1226 = vsyncpa [#allocation7], 1 }
 0x5f1   :  { %1228 = vsyncpa [#allocation7 + $0x1], 1 }
 0x5f2   :  { %1229 = vsyncpa [#allocation10], 1 }
 0x5f3   :  { %1231 = vsyncpa [#allocation10 + $0x1], 1 }
 0x5f4   :  { %1232 = vsyncpa [#allocation13], 1 }
 0x5f5   :  { %1233 = vsyncpa [#allocation16], 1 }
 0x5f6   :  { %1234 = vsyncpa [#allocation8], 1 }
 0x5f7   :  { %1236 = vsyncpa [#allocation8 + $0x1], 1 }

</bundles_post_ra>
